<compile_context>
chip_gen: v6e
topology: v6e:2x2x1
jax: 0.10.0
libtpu: 0.0.40
codegen_flags: <defaults>
</compile_context>

<pallas_src>
import functools

import jax
import jax.numpy as jnp
from jax.experimental import pallas as pl
from jax.experimental.pallas import tpu as pltpu

PAD = 128  # lane-dense padded width for the hidden/output slabs


# ---------------------------------------------------------------------------
# Kernel
# ---------------------------------------------------------------------------
def _coxnnet2_kernel(x_ref, w_ref, o_ref, *, in_dim, aug):
    """x_ref: (B_pad, in_dim); w_ref: (3, 128, 128) augmented; o_ref: (B_pad, 128)."""
    w0 = w_ref[0]
    # layer1: x @ W1 (K = in_dim), then add row `aug` of W1: that row is b1 on
    # the real lanes and 1.0 at lane `aug`, so one broadcast-add both applies
    # the layer-1 bias and plants the bias-carrier "1" lane for layers 2/3.
    h = jnp.dot(x_ref[...], w0[:in_dim, :], preferred_element_type=jnp.float32)
    h = jnp.maximum(h + w0[aug : aug + 1, :], 0.0)
    # layer2: augmented matmul — b2 comes in through the carrier lane; the
    # carrier survives (W2[aug, aug] = 1, relu(1) = 1).
    h = jnp.maximum(jnp.dot(h, w_ref[1], preferred_element_type=jnp.float32), 0.0)
    # layer3: augmented matmul adds b3; lane-dense (B_pad, 128) store.
    o_ref[...] = jnp.dot(h, w_ref[2], preferred_element_type=jnp.float32)


# ---------------------------------------------------------------------------
# One-time parameter packing (hoisted OUT of the hot path)
# ---------------------------------------------------------------------------
def pack_params(params, dtype=jnp.float32):
    """Pack w1/w2/w3 ((in,out)) + b1/b2/b3 into one augmented (3,128,128) stack.

    Do this ONCE at parameter-load time; the forward only consumes the result.
    `dtype=jnp.bfloat16` is the recommended operand dtype on v6e/v7x once the
    batch scales (accumulation stays f32 inside the kernel).
    """
    w1, w2, w3 = params["w1"], params["w2"], params["w3"]
    b1, b2, b3 = params["b1"], params["b2"], params["b3"]
    in_dim, h1 = w1.shape
    h2 = w2.shape[1]
    out_dim = w3.shape[1]
    dims = (in_dim, h1, h2, out_dim)
    assert all(d <= PAD - 8 for d in dims), "need a spare aligned lane for the bias carrier"
    # Sublane-aligned spare lane that is >= every real width.
    aug = ((max(dims) + 7) // 8) * 8

    def aug_weight(w, b, carry):
        m = jnp.zeros((PAD, PAD), jnp.float32)
        m = m.at[: w.shape[0], : w.shape[1]].set(w)
        m = m.at[aug, : b.shape[-1]].set(b.reshape(-1))
        if carry:  # keep the "1" carrier alive for the next layer's bias
            m = m.at[aug, aug].set(1.0)
        return m

    w_stack = jnp.stack(
        [aug_weight(w1, b1, True), aug_weight(w2, b2, True), aug_weight(w3, b3, False)]
    ).astype(dtype)
    return {"w_stack": w_stack, "aug": aug, "in_dim": in_dim, "out_dim": out_dim}


# ---------------------------------------------------------------------------
# Forward
# ---------------------------------------------------------------------------
def coxnnet2_forward(x, packed):
    """x: (B, in_dim) float32; packed: output of pack_params()."""
    B, in_dim = x.shape
    assert in_dim == packed["in_dim"]
    B_pad = max(8, ((B + 7) // 8) * 8)
    if B_pad != B:  # sublane-pad the batch only when needed (no-op at B=8)
        x = jnp.pad(x, ((0, B_pad - B), (0, 0)))
    x = x.astype(packed["w_stack"].dtype)

    vmem = pl.BlockSpec(memory_space=pltpu.MemorySpace.VMEM)
    kernel = functools.partial(_coxnnet2_kernel, in_dim=in_dim, aug=packed["aug"])
    out_p = pl.pallas_call(
        kernel,
        out_shape=jax.ShapeDtypeStruct((B_pad, PAD), jnp.float32),
        in_specs=[vmem, vmem],
        out_specs=vmem,
    )(x, packed["w_stack"])

    # Slice the real rows / columns back out of the lane-dense slab.
    return out_p[:B, : packed["out_dim"]]


# ---------------------------------------------------------------------------
# Init + reference (for validation only)
# ---------------------------------------------------------------------------
def init_params(key, in_dim, h1, h2, out_dim):
    """PyTorch-style uniform(-1/sqrt(fan_in), 1/sqrt(fan_in)); W stored (in, out)."""
    dims = [(in_dim, h1), (h1, h2), (h2, out_dim)]
    params = {}
    for idx, (fan_in, fan_out) in enumerate(dims, start=1):
        key, kw, kb = jax.random.split(key, 3)
        bound = 1.0 / (fan_in ** 0.5)
        params[f"w{idx}"] = jax.random.uniform(
            kw, (fan_in, fan_out), jnp.float32, -bound, bound)
        params[f"b{idx}"] = jax.random.uniform(
            kb, (1, fan_out), jnp.float32, -bound, bound)
    return params


def reference_forward(x, p):
    hi = jax.lax.Precision.HIGHEST
    h = jnp.maximum(jnp.dot(x, p["w1"], precision=hi) + p["b1"], 0.0)
    h = jnp.maximum(jnp.dot(h, p["w2"], precision=hi) + p["b2"], 0.0)
    return jnp.dot(h, p["w3"], precision=hi) + p["b3"]


if __name__ == "__main__":
    # Small shapes implied by the module (opt.*): in_dim=32, n_hidden_1=32,
    # n_hidden_2=32, out_dim=16, batch=8.
    B, IN_DIM, H1, H2, OUT_DIM = 8, 32, 32, 32, 16

    key = jax.random.PRNGKey(0)
    key, kx = jax.random.split(key)
    x = jax.random.normal(kx, (B, IN_DIM), jnp.float32)
    params = init_params(key, IN_DIM, H1, H2, OUT_DIM)

    packed = pack_params(params)              # one-time prep, out of hot path
    packed["w_stack"] = jax.block_until_ready(packed["w_stack"])

    out = coxnnet2_forward(x, packed)
    out = jax.block_until_ready(out)

    ref = reference_forward(x, params)
    assert out.shape == (B, OUT_DIM)
    assert jnp.allclose(out, ref, atol=1e-4, rtol=1e-4), "mismatch vs JAX reference"

    print("KERNEL_OK")
</pallas_src>

<mosaic_0001>
module attributes {stable_mosaic.version = 11 : i64} {
  func.func @_coxnnet2_kernel(%arg0: memref<8x32xf32, #tpu.memory_space<vmem>>, %arg1: memref<3x128x128xf32, #tpu.memory_space<vmem>>, %arg2: memref<8x128xf32, #tpu.memory_space<vmem>>) attributes {dimension_semantics = [], scalar_prefetch = 0 : i64, scratch_operands = 0 : i64, tpu.core_type = #tpu.core_type<tc>} {
    %c0 = arith.constant 0 : index
    %c0_0 = arith.constant 0 : index
    %c0_1 = arith.constant 0 : index
    %0 = vector.load %arg1[%c0, %c0_0, %c0_1] : memref<3x128x128xf32, #tpu.memory_space<vmem>>, vector<1x128x128xf32>
    %1 = vector.shape_cast %0 : vector<1x128x128xf32> to vector<128x128xf32>
    %c0_2 = arith.constant 0 : index
    %c0_3 = arith.constant 0 : index
    %2 = vector.load %arg0[%c0_2, %c0_3] : memref<8x32xf32, #tpu.memory_space<vmem>>, vector<8x32xf32>
    %3 = vector.extract_strided_slice %1 {offsets = [0, 0], sizes = [32, 128], strides = [1, 1]} : vector<128x128xf32> to vector<32x128xf32>
    %cst = arith.constant dense<0.000000e+00> : vector<8x128xf32>
    %4 = tpu.matmul %2, %3, %cst {dimension_numbers = #tpu.dot_dimension_numbers<[1], [0], [0], [1], [0, 0, 1, 1], [], []>} : vector<8x32xf32>, vector<32x128xf32>, vector<8x128xf32> -> vector<8x128xf32>
    %5 = vector.extract_strided_slice %1 {offsets = [32, 0], sizes = [1, 128], strides = [1, 1]} : vector<128x128xf32> to vector<1x128xf32>
    %6 = vector.broadcast %5 : vector<1x128xf32> to vector<8x128xf32>
    %7 = arith.addf %4, %6 : vector<8x128xf32>
    %cst_4 = arith.constant 0.000000e+00 : f32
    %8 = vector.broadcast %cst_4 : f32 to vector<8x128xf32>
    %9 = arith.maximumf %7, %8 : vector<8x128xf32>
    %c1 = arith.constant 1 : index
    %c0_5 = arith.constant 0 : index
    %c0_6 = arith.constant 0 : index
    %10 = vector.load %arg1[%c1, %c0_5, %c0_6] : memref<3x128x128xf32, #tpu.memory_space<vmem>>, vector<1x128x128xf32>
    %11 = vector.shape_cast %10 : vector<1x128x128xf32> to vector<128x128xf32>
    %cst_7 = arith.constant dense<0.000000e+00> : vector<8x128xf32>
    %12 = tpu.matmul %9, %11, %cst_7 {dimension_numbers = #tpu.dot_dimension_numbers<[1], [0], [0], [1], [0, 0, 1, 1], [], []>} : vector<8x128xf32>, vector<128x128xf32>, vector<8x128xf32> -> vector<8x128xf32>
    %cst_8 = arith.constant 0.000000e+00 : f32
    %13 = vector.broadcast %cst_8 : f32 to vector<8x128xf32>
    %14 = arith.maximumf %12, %13 : vector<8x128xf32>
    %c2 = arith.constant 2 : index
    %c0_9 = arith.constant 0 : index
    %c0_10 = arith.constant 0 : index
    %15 = vector.load %arg1[%c2, %c0_9, %c0_10] : memref<3x128x128xf32, #tpu.memory_space<vmem>>, vector<1x128x128xf32>
    %16 = vector.shape_cast %15 : vector<1x128x128xf32> to vector<128x128xf32>
    %cst_11 = arith.constant dense<0.000000e+00> : vector<8x128xf32>
    %17 = tpu.matmul %14, %16, %cst_11 {dimension_numbers = #tpu.dot_dimension_numbers<[1], [0], [0], [1], [0, 0, 1, 1], [], []>} : vector<8x128xf32>, vector<128x128xf32>, vector<8x128xf32> -> vector<8x128xf32>
    %c0_12 = arith.constant 0 : index
    %c0_13 = arith.constant 0 : index
    %18 = vector.load %arg2[%c0_12, %c0_13] : memref<8x128xf32, #tpu.memory_space<vmem>>, vector<8x128xf32>
    tpu.vector_store %arg2[%c0_12, %c0_13], %17 {strides = array<i32>} : memref<8x128xf32, #tpu.memory_space<vmem>>, vector<8x128xf32>,
    return
  }
}

</mosaic_0001>

<bundles_post_ra>
// kernel: tpu_custom_call.1
= control target key start
LH: loop header
LB: loop body
LE: loop exit
PB: predicated region body
PF: predicated region fallthrough
CT: control target
= control target key end

     0   :  { %7 = vsyncpa [#allocation3], 0  ;;  %s582_s0 = inlined_call_operand.hbm [shape: f32[8,32], index: 0, kind: input, shape index: {}]   ;;  %s583_s1 = inlined_call_operand.hbm [shape: f32[3,128,128], index: 1, kind: input, shape index: {}]   ;;  %s584_s2 = inlined_call_operand.hbm [shape: f32[8,128], index: 2, kind: output, shape index: {}]  }
   0x1   :  { %8 = vsyncpa [#allocation6], 0 }
   0x2   :  { %9 = vsyncpa [#allocation4], 0  ;;  %s509_s9 = smov [#allocation2]   ;;  %s510_s11 = smov [#allocation5]  }
   0x3   :  { %s16_s10 = sshll.u32 %s509_s9, 4  ;;  %s25_s12 = sshll.u32 %s510_s11, 4  ;;  %s17_s10 = int_to_ptr.vmem [resolvable:$true] %s16_s10  ;;  %s26_s12 = int_to_ptr.vmem [resolvable:$true] %s25_s12 }
   0x4   :  { %s451_s13 = scalar_lea.vmem %s17_s10, 128  ;;  %p456_p1 = scmp.lt.s32.totalorder %s17_s10, %s17_s10 }
   0x5   :  { %p452_p0 = scmp.ne.s32.totalorder %s17_s10, %s451_s13  ;;  %p457_p2 = scmp.lt.s32.totalorder %s451_s13, %s451_s13 }
   0x7   :  { %p458_p3 = por %p457_p2, %p456_p1 }
   0x9   :  { %p459_p4 = pnand %p458_p3, %p452_p0 }
   0xb   :  { %462 = shalt.err (!%p459_p4)
}
   0xc   :  { %19 = dma.hbm_to_vmem [thread:$0]  %s582_s0, 128, %s17_s10, [#allocation3]  }
   0xd   :  { %s471_s16 = scalar_lea.vmem %s26_s12, 6144  ;;  %p476_p6 = scmp.lt.s32.totalorder %s26_s12, %s26_s12 }
   0xe   :  { %p472_p5 = scmp.ne.s32.totalorder %s26_s12, %s471_s16  ;;  %p477_p7 = scmp.lt.s32.totalorder %s471_s16, %s471_s16 }
  0x10   :  { %p478_p8 = por %p477_p7, %p476_p6 }
  0x12   :  { %p479_p9 = pnand %p478_p8, %p472_p5 }
  0x14   :  { %482 = shalt.err (!%p479_p9)
}
  0x15   :  { %s511_s17 = smov 128   ;;  %s512_s18 = smov 8  }
  0x16   :  { %31 = dma.hbm_to_vmem [thread:$0]  %s583_s1, 6144, %s26_s12, [#allocation6], %s511_s17, %s511_s17, %s512_s18  }
  0x17   :  { %503 = dma.done.wait [#allocation3], 128  }
  0x18   :  { %504 = vsyncadd [#allocation3], 4294967168 }
  0x19   :  { %505 = dma.done.wait [#allocation6], 6144  }
  0x1a   :  { %506 = vsyncadd [#allocation6], 4294961152  ;;  %v513_v0 = vmov 0.0   ;;  %vm514_vm0 = vmmov 0   ;;  %v41_v1 = vld [vmem:[#allocation5 + $0x18] sm:$0xff]  ;;  %v40_v2 = vld [vmem:[#allocation5 + $0x10] sm:$0xff]  ;;  %v44_v36 = vlaneseq }
  0x1b   :  { %355 = vmatprep.subr.mxu0 %v513_v0  ;;  %363 = vmatprep.mubr.msk.f32.mxu0 %vm514_vm0, %v513_v0  ;;  %v139_v3 = vld [vmem:[#allocation5 + $0xf8] sm:$0xff]  ;;  %v39_v4 = vld [vmem:[#allocation5 + $0x8] sm:$0xff]  ;;  %v138_v5 = vld [vmem:[#allocation5 + $0xf0] sm:$0xff]  ;;  %vm48_vm1 = vcmask 261120   ;;  %s515_s0 = smov [#allocation7]  }
  0x1c   :  { %366 = vmatprep.subr.mxu1 %v513_v0  ;;  %398 = vmatprep.mubr.msk.f32.mxu1 %vm514_vm0, %v513_v0  ;;  %v137_v6 = vld [vmem:[#allocation5 + $0xe8] sm:$0xff]  ;;  %v38_v7 = vld [vmem:[#allocation5] sm:$0xff]  ;;  %v43_v8 = vld [vmem:[#allocation2] sm:$0xff]  ;;  %v45_v37 = vshrl.u32 %v44_v36, 7  ;;  %s305_s1 = sshll.u32 %s515_s0, 4  ;;  %s306_s1 = int_to_ptr.vmem [resolvable:$true] %s305_s1 }
  0x1d   :  { %356 = vmatpush3.msra.mxu0 %v41_v1  ;;  %367 = vmatpush3.msra.mxu1 %v139_v3  ;;  %v136_v9 = vld [vmem:[#allocation5 + $0xe0] sm:$0xff]  ;;  %v135_v10 = vld [vmem:[#allocation5 + $0xd8] sm:$0xff]  ;;  %v134_v11 = vld [vmem:[#allocation5 + $0xd0] sm:$0xff]  ;;  %s483_s21 = scalar_lea.vmem %s306_s1, 128  ;;  %p488_p11 = scmp.lt.s32.totalorder %s306_s1, %s306_s1 }
  0x1e   :  { %357 = vmatprep.subr.mxu0 %v513_v0  ;;  %368 = vmatprep.subr.mxu1 %v513_v0  ;;  %v133_v12 = vld [vmem:[#allocation5 + $0xc8] sm:$0xff]  ;;  %v132_v13 = vld [vmem:[#allocation5 + $0xc0] sm:$0xff]  ;;  %v131_v14 = vld [vmem:[#allocation5 + $0xb8] sm:$0xff]  ;;  %v46_v38 = vsub.s32 0, %v45_v37  ;;  %p484_p10 = scmp.ne.s32.totalorder %s306_s1, %s483_s21  ;;  %p489_p12 = scmp.lt.s32.totalorder %s483_s21, %s483_s21 }
  0x1f   :  { %358 = vmatpush3.msra.mxu0 %v40_v2  ;;  %369 = vmatpush3.msra.mxu1 %v138_v5  ;;  %v130_v15 = vld [vmem:[#allocation5 + $0xb0] sm:$0xff]  ;;  %v129_v16 = vld [vmem:[#allocation5 + $0xa8] sm:$0xff]  ;;  %v128_v17 = vld [vmem:[#allocation5 + $0xa0] sm:$0xff] }
  0x20   :  { %359 = vmatprep.subr.mxu0 %v513_v0  ;;  %370 = vmatprep.subr.mxu1 %v513_v0  ;;  %v127_v18 = vld [vmem:[#allocation5 + $0x98] sm:$0xff]  ;;  %v126_v19 = vld [vmem:[#allocation5 + $0x90] sm:$0xff]  ;;  %v125_v20 = vld [vmem:[#allocation5 + $0x88] sm:$0xff]  ;;  %p490_p13 = por %p489_p12, %p488_p11 }
  0x21   :  { %360 = vmatpush3.msra.mxu0 %v39_v4  ;;  %371 = vmatpush3.msra.mxu1 %v137_v6  ;;  %v124_v21 = vld [vmem:[#allocation5 + $0x80] sm:$0xff]  ;;  %v227_v22 = vld [vmem:[#allocation5 + $0x178] sm:$0xff]  ;;  %v226_v23 = vld [vmem:[#allocation5 + $0x170] sm:$0xff] }
  0x22   :  { %361 = vmatprep.subr.mxu0 %v513_v0  ;;  %372 = vmatprep.subr.mxu1 %v513_v0  ;;  %v225_v24 = vld [vmem:[#allocation5 + $0x168] sm:$0xff]  ;;  %v224_v25 = vld [vmem:[#allocation5 + $0x160] sm:$0xff]  ;;  %v223_v26 = vld [vmem:[#allocation5 + $0x158] sm:$0xff]  ;;  %p491_p0 = pnand %p490_p13, %p484_p10 }
  0x23   :  { %362 = vmatpush3.msra.mxu0 %v38_v7  ;;  %373 = vmatpush3.msra.mxu1 %v136_v9  ;;  %v222_v27 = vld [vmem:[#allocation5 + $0x150] sm:$0xff]  ;;  %v221_v28 = vld [vmem:[#allocation5 + $0x148] sm:$0xff]  ;;  %v220_v29 = vld [vmem:[#allocation5 + $0x140] sm:$0xff] }
  0x24   :  { %364 = vmatmul.mubr.msk.f32.vlgmr.msra.gmra.mxu0 %vm48_vm1, %v43_v8  ;;  %374 = vmatprep.subr.mxu1 %v513_v0  ;;  %v219_v30 = vld [vmem:[#allocation5 + $0x138] sm:$0xff]  ;;  %v218_v31 = vld [vmem:[#allocation5 + $0x130] sm:$0xff]  ;;  %v217_v32 = vld [vmem:[#allocation5 + $0x128] sm:$0xff] }
  0x25   :  { %401 = vmatprep.subr.mxu0 %v513_v0  ;;  %375 = vmatpush3.msra.mxu1 %v135_v10  ;;  %v216_v33 = vld [vmem:[#allocation5 + $0x120] sm:$0xff]  ;;  %v215_v34 = vld [vmem:[#allocation5 + $0x118] sm:$0xff]  ;;  %v214_v35 = vld [vmem:[#allocation5 + $0x110] sm:$0xff] }
  0x26   :  { %433 = vmatprep.mubr.msk.f32.mxu0 %vm514_vm0, %v513_v0  ;;  %376 = vmatprep.subr.mxu1 %v513_v0  ;;  %v42_v39 = vld [vmem:[#allocation5 + $0x20] sm:$0xff]  ;;  %v213_v45 = vld [vmem:[#allocation5 + $0x108] sm:$0xff] }
  0x27   :  { %377 = vmatpush3.msra.mxu1 %v134_v11  ;;  %402 = vmatpush3.msra.mxu0 %v227_v22  ;;  %v47_v40 = vrot.slane %v42_v39, %v46_v38  ;;  %v212_v46 = vld [vmem:[#allocation5 + $0x100] sm:$0xff] }
  0x28   :  { %378 = vmatprep.subr.mxu1 %v513_v0  ;;  %403 = vmatprep.subr.mxu0 %v513_v0 }
  0x29   :  { %379 = vmatpush3.msra.mxu1 %v133_v12  ;;  %404 = vmatpush3.msra.mxu0 %v226_v23 }
  0x2a   :  { %380 = vmatprep.subr.mxu1 %v513_v0  ;;  %405 = vmatprep.subr.mxu0 %v513_v0 }
  0x2b   :  { %381 = vmatpush3.msra.mxu1 %v132_v13  ;;  %406 = vmatpush3.msra.mxu0 %v225_v24 }
  0x2c   :  { %382 = vmatprep.subr.mxu1 %v513_v0  ;;  %407 = vmatprep.subr.mxu0 %v513_v0 }
  0x2d   :  { %383 = vmatpush3.msra.mxu1 %v131_v14  ;;  %408 = vmatpush3.msra.mxu0 %v224_v25 }
  0x2e   :  { %384 = vmatprep.subr.mxu1 %v513_v0  ;;  %409 = vmatprep.subr.mxu0 %v513_v0 }
  0x2f   :  { %385 = vmatpush3.msra.mxu1 %v130_v15  ;;  %410 = vmatpush3.msra.mxu0 %v223_v26 }
  0x30   :  { %386 = vmatprep.subr.mxu1 %v513_v0  ;;  %411 = vmatprep.subr.mxu0 %v513_v0 }
  0x31   :  { %387 = vmatpush3.msra.mxu1 %v129_v16  ;;  %412 = vmatpush3.msra.mxu0 %v222_v27 }
  0x32   :  { %388 = vmatprep.subr.mxu1 %v513_v0  ;;  %413 = vmatprep.subr.mxu0 %v513_v0 }
  0x33   :  { %389 = vmatpush3.msra.mxu1 %v128_v17  ;;  %414 = vmatpush3.msra.mxu0 %v221_v28 }
  0x34   :  { %390 = vmatprep.subr.mxu1 %v513_v0  ;;  %415 = vmatprep.subr.mxu0 %v513_v0 }
  0x35   :  { %391 = vmatpush3.msra.mxu1 %v127_v18  ;;  %416 = vmatpush3.msra.mxu0 %v220_v29 }
  0x36   :  { %392 = vmatprep.subr.mxu1 %v513_v0  ;;  %417 = vmatprep.subr.mxu0 %v513_v0 }
  0x37   :  { %393 = vmatpush3.msra.mxu1 %v126_v19  ;;  %418 = vmatpush3.msra.mxu0 %v219_v30 }
  0x38   :  { %394 = vmatprep.subr.mxu1 %v513_v0  ;;  %419 = vmatprep.subr.mxu0 %v513_v0 }
  0x39   :  { %395 = vmatpush3.msra.mxu1 %v125_v20  ;;  %420 = vmatpush3.msra.mxu0 %v218_v31 }
  0x3a   :  { %396 = vmatprep.subr.mxu1 %v513_v0  ;;  %421 = vmatprep.subr.mxu0 %v513_v0 }
  0x3b   :  { %397 = vmatpush3.msra.mxu1 %v124_v21  ;;  %422 = vmatpush3.msra.mxu0 %v217_v32 }
  0x3c   :  { %423 = vmatprep.subr.mxu0 %v513_v0 }
  0x3d   :  { %424 = vmatpush3.msra.mxu0 %v216_v33 }
  0x3e   :  { %425 = vmatprep.subr.mxu0 %v513_v0 }
  0x3f   :  { %426 = vmatpush3.msra.mxu0 %v215_v34 }
  0x40   :  { %427 = vmatprep.subr.mxu0 %v513_v0 }
  0x41   :  { %428 = vmatpush3.msra.mxu0 %v214_v35 }
  0x42   :  { %429 = vmatprep.subr.mxu0 %v513_v0 }
  0x43   :  { %430 = vmatpush3.msra.mxu0 %v213_v45 }
  0x44   :  { %431 = vmatprep.subr.mxu0 %v513_v0 }
  0x45   :  { %432 = vmatpush3.msra.mxu0 %v212_v46 }
  0xe4   :  { %v118_v41 = vpop.f32.mrf.mxu0 }
  0xe5   :  { %v119_v42 = vadd.f32 %v118_v41, %v47_v40 }
  0xe6   :  { %v365_v43 = vpop.f32.mrf.mxu0 }
  0xe7   :  { %v122_v44 = vmax.f32 %v119_v42, 0.0 }
  0xe9   :  { %399 = vmatmul.mubr.f32.vlgmr.msra.gmra.mxu1 %v122_v44 }
 0x1a9   :  { %v206_v47 = vpop.f32.mrf.mxu1 }
 0x1aa   :  { %v210_v48 = vmax.f32 %v206_v47, 0.0 }
 0x1ab   :  { %v400_v49 = vpop.f32.mrf.mxu1 }
 0x1ac   :  { %434 = vmatmul.mubr.f32.vlgmr.msra.gmra.mxu0 %v210_v48 }
 0x26c   :  { %v294_v50 = vpop.f32.mrf.mxu0 }
 0x26d   :  { %298 = vst [vmem:[#allocation7] sm:$0xff] %v294_v50 }
 0x26e   :  { %v435_v51 = vpop.f32.mrf.mxu0 }
 0x26f   :  { %494 = shalt.err (!%p491_p0)
}
 0x270   :  { %308 = dma.vmem_to_hbm [thread:$0]  %s306_s1, 128, %s584_s2, [#allocation4]  }
 0x271   :  { %507 = dma.done.wait [#allocation4], 128  }
 0x272   :  { %508 = vsyncadd [#allocation4], 4294967168 }
 0x273   :  { %312 = vsyncpa [#allocation3], 1 }
 0x274   :  { %313 = vsyncpa [#allocation6], 1 }
 0x275   :  { %314 = vsyncpa [#allocation4], 1 }

</bundles_post_ra>
